<compile_context>
chip_gen: v7x
topology: tpu7x:2x2x1
jax: 0.10.0
libtpu: 0.0.40
codegen_flags: <defaults>
</compile_context>

<pallas_src>
import math

import jax
import jax.numpy as jnp
from jax.experimental import pallas as pl
from jax.experimental.pallas import tpu as pltpu

# ----- small config consistent with the module -----
EMSIZE = 32          # emsize (k/v dim of MHA)
EMBED_DIM = 64       # embed_dim (query / attention dim)
NHEAD = 4
HEAD_DIM = EMBED_DIM // NHEAD
N_FEATURES = 8
RANK = 4
N_BINS = 16
N_OUT = 4
HIDDEN = 64          # decoder MLP hidden_size
SEQ = 8
BATCH = 2
NUM_OUT_W = RANK * N_FEATURES           # num_output_layer_weights (biattention=False)
OUT_FLAT = N_FEATURES * N_BINS * N_OUT  # 512 = 4*128 lanes (lane-dense output)

# ----- slab-A row layout (width = 128 lanes, f32) -----
ROW_WVQ = 0                       # rows [0,32):  lanes 0:64 = wv, lanes 64:68 = qscore_w
ROW_VEXP = EMSIZE                 # rows [32,36): lanes 0:64 = head->lane one-hot expansion
ROW_BIAS = ROW_VEXP + NHEAD       # row 36:       lanes 0:64 = bv, lanes 64:128 = b1f
ROW_W1 = 40                       # rows [40,104): lanes 0:64 = folded (wo @ w1)   (8-aligned)
SLAB_ROWS = ROW_W1 + EMBED_DIM    # 104


# ---------------------------- fused Pallas kernel ----------------------------

def _fused_decoder_kernel(x_ref, slab_ref, w2b_ref, out_ref):
    """Whole forward for one batch tile; everything resident in VMEM.

    x_ref    : (seq, tb, EMSIZE)        native seq-major input tile
    slab_ref : (SLAB_ROWS, 128) f32     packed small weights (see layout above)
    w2b_ref  : (HIDDEN+1, 512)  bf16    rows 0:64 = folded layer-2 weights, row 64 = its bias
    out_ref  : (tb, 512)        f32     flattened (tb, n_features, n_bins, n_out)
    """
    f32 = jnp.float32
    seq, tb, emsize = x_ref.shape
    xf = x_ref[...].reshape(seq * tb, emsize)                         # seq-major rows (s, b)

    # v-projection and per-head scores both depend only on x -> the two MXU pushes overlap.
    # (k-projection is gone entirely; bk's score contribution cancels in the seq-softmax.)
    v = (jnp.dot(xf, slab_ref[ROW_WVQ:ROW_WVQ + emsize, 0:EMBED_DIM],
                 preferred_element_type=f32)
         + slab_ref[ROW_BIAS:ROW_BIAS + 1, 0:EMBED_DIM])              # (seq*tb, 64)
    scores = jnp.dot(xf, slab_ref[ROW_WVQ:ROW_WVQ + emsize,
                                  EMBED_DIM:EMBED_DIM + NHEAD],
                     preferred_element_type=f32)                      # (seq*tb, NHEAD)

    # softmax over seq (axis 0), all in f32; divide on the EUP via approx reciprocal
    s3 = scores.reshape(seq, tb, NHEAD)
    s3 = s3 - jnp.max(s3, axis=0, keepdims=True)
    p3 = jnp.exp(s3)
    attn3 = p3 * pl.reciprocal(jnp.sum(p3, axis=0, keepdims=True), approx=True)
    attn = attn3.reshape(seq * tb, NHEAD)

    # expand per-head attention onto the 64 v lanes (tiny MXU op), weight v, reduce over seq
    attn_l = jnp.dot(attn, slab_ref[ROW_VEXP:ROW_VEXP + NHEAD, 0:EMBED_DIM],
                     preferred_element_type=f32)                      # (seq*tb, 64)
    o = jnp.sum((attn_l * v).reshape(seq, tb, EMBED_DIM), axis=0)     # (tb, 64)

    # folded out-proj + MLP layer 1 -> ReLU
    h = jnp.maximum(
        jnp.dot(o, slab_ref[ROW_W1:ROW_W1 + EMBED_DIM, 0:HIDDEN],
                preferred_element_type=f32)
        + slab_ref[ROW_BIAS:ROW_BIAS + 1, EMBED_DIM:EMBED_DIM + HIDDEN], 0.0)   # (tb, HIDDEN)

    # folded (MLP layer 2 x output_weights): bf16 MXU operands, f32 accumulate, f32 store
    out_ref[...] = (jnp.dot(h.astype(w2b_ref.dtype), w2b_ref[0:HIDDEN, :],
                            preferred_element_type=f32)
                    + w2b_ref[HIDDEN:HIDDEN + 1, :].astype(f32))


# ---------------------------- parameter preprocessing (one-time) ----------------------------

def prepare_params(p):
    """Algebraic folds + packing into 2 lane-dense slabs. Called once at setup."""
    f32 = jnp.float32
    scale = 1.0 / math.sqrt(HEAD_DIM)

    # batch-invariant query projection, hoisted out of the kernel
    q_proj = (p["query"] @ p["wq"] + p["bq"]).reshape(EMBED_DIM)                 # (64,)
    head_onehot = (jnp.arange(EMBED_DIM)[:, None] // HEAD_DIM
                   == jnp.arange(NHEAD)[None, :]).astype(f32)                    # (64, 4)

    # per-head score weights folded all the way to the input:
    #   scores[n,h] = sum_{d in head h} (x @ wk)[n,d] * q[d] / sqrt(HD)
    # (bk term is constant over seq -> softmax-invariant -> dropped everywhere)
    q_blk = q_proj[:, None] * head_onehot * scale                                # (64, 4)
    qscore_w = p["wk"] @ q_blk                                                   # (32, 4)

    # fold attention out-proj into MLP layer 1 (no nonlinearity in between)
    w1f = p["wo"] @ p["w1"]                                                      # (64, 64)
    b1f = (p["bo"] @ p["w1"] + p["b1"]).reshape(HIDDEN)                          # (64,)

    # fold MLP layer 2 with the rank-factorized output weights -> (HIDDEN, 512), (512,)
    w2r = p["w2"].reshape(HIDDEN, N_FEATURES, RANK)
    w2f = jnp.einsum("hkr,rdo->hkdo", w2r, p["output_weights"]).reshape(HIDDEN, OUT_FLAT)
    b2r = p["b2"].reshape(N_FEATURES, RANK)
    b2f = jnp.einsum("kr,rdo->kdo", b2r, p["output_weights"]).reshape(OUT_FLAT)

    # ---- slab A (f32): every small weight in one contiguous (104, 128) array ----
    slab_a = jnp.zeros((SLAB_ROWS, 128), f32)
    slab_a = slab_a.at[ROW_WVQ:ROW_WVQ + EMSIZE, 0:EMBED_DIM].set(p["wv"])
    slab_a = slab_a.at[ROW_WVQ:ROW_WVQ + EMSIZE, EMBED_DIM:EMBED_DIM + NHEAD].set(qscore_w)
    slab_a = slab_a.at[ROW_VEXP:ROW_VEXP + NHEAD, 0:EMBED_DIM].set(head_onehot.T)
    slab_a = slab_a.at[ROW_BIAS, 0:EMBED_DIM].set(p["bv"].reshape(EMBED_DIM))
    slab_a = slab_a.at[ROW_BIAS, EMBED_DIM:EMBED_DIM + HIDDEN].set(b1f)
    slab_a = slab_a.at[ROW_W1:ROW_W1 + EMBED_DIM, 0:HIDDEN].set(w1f)

    # ---- slab B (bf16): the dominant payload, halved in bytes; accumulation stays f32 ----
    slab_b = jnp.concatenate([w2f, b2f[None, :]], axis=0).astype(jnp.bfloat16)   # (65, 512)

    return dict(slab_a=slab_a, slab_b=slab_b, output_biases=p["output_biases"])


def _batch_tile(batch):
    """Batch-tile size: <=512 rows so double-buffered tiles stay far under v7x's 64 MiB VMEM."""
    if batch <= 512:
        return batch
    for tb in (512, 256, 128, 64, 32, 16, 8):
        if batch % tb == 0:
            return tb
    return batch   # fallback: single full block


# ---------------------------- wrapper ----------------------------

@jax.jit
def factorized_additive_model_decoder(x, y_src, prepared):
    # y_src is unused for decoder_type='output_attention' (same as PyTorch)
    del y_src
    seq, batch, emsize = x.shape
    assert emsize == EMSIZE
    tb = _batch_tile(batch)

    out_flat = pl.pallas_call(
        _fused_decoder_kernel,
        out_shape=jax.ShapeDtypeStruct((batch, OUT_FLAT), jnp.float32),
        grid=(batch // tb,),
        in_specs=[
            pl.BlockSpec((seq, tb, emsize), lambda i: (0, i, 0)),          # x tile
            pl.BlockSpec((SLAB_ROWS, 128), lambda i: (0, 0)),              # weights: resident
            pl.BlockSpec((HIDDEN + 1, OUT_FLAT), lambda i: (0, 0)),        # weights: resident
        ],
        out_specs=pl.BlockSpec((tb, OUT_FLAT), lambda i: (i, 0)),
        compiler_params=pltpu.CompilerParams(
            dimension_semantics=("parallel",)),                            # shards on v7x's 2 TCs
    )(x, prepared["slab_a"], prepared["slab_b"])

    out = out_flat.reshape(batch, N_FEATURES, N_BINS, N_OUT)
    return out, prepared["output_biases"]


# ---------------------------- params / reference ----------------------------

def init_params(key):
    ks = jax.random.split(key, 15)

    def n(k, shape, scale):
        return (scale * jax.random.normal(k, shape)).astype(jnp.float32)

    s = 0.05
    return dict(
        query=n(ks[0], (1, EMBED_DIM), 1.0),              # nn.Parameter(randn(1,1,embed_dim))
        wq=n(ks[1], (EMBED_DIM, EMBED_DIM), s),           # q_proj_weight^T
        wk=n(ks[2], (EMSIZE, EMBED_DIM), s),              # k_proj_weight^T
        wv=n(ks[3], (EMSIZE, EMBED_DIM), s),              # v_proj_weight^T
        bq=n(ks[4], (1, EMBED_DIM), s),
        bk=n(ks[5], (1, EMBED_DIM), s),
        bv=n(ks[6], (1, EMBED_DIM), s),
        wo=n(ks[7], (EMBED_DIM, EMBED_DIM), s),           # out_proj.weight^T
        bo=n(ks[8], (1, EMBED_DIM), s),
        w1=n(ks[9], (EMBED_DIM, HIDDEN), s),              # mlp Linear 1 weight^T
        b1=n(ks[10], (1, HIDDEN), s),
        w2=n(ks[11], (HIDDEN, NUM_OUT_W), s),             # mlp Linear 2 weight^T
        b2=n(ks[12], (1, NUM_OUT_W), s),
        output_weights=n(ks[13], (RANK, N_BINS, N_OUT), 1.0),
        output_biases=n(ks[14], (N_OUT,), 1.0),
    )


def reference_forward(x, p):
    """Pure-JAX reference mirroring the PyTorch forward (unfolded f32 parameters)."""
    S, B, _ = x.shape
    q = p["query"] @ p["wq"] + p["bq"]                               # (1, E)
    k = jnp.einsum("sbe,ed->sbd", x, p["wk"]) + p["bk"]              # (S, B, E)
    v = jnp.einsum("sbe,ed->sbd", x, p["wv"]) + p["bv"]
    qh = q.reshape(NHEAD, HEAD_DIM)
    kh = k.reshape(S, B, NHEAD, HEAD_DIM)
    vh = v.reshape(S, B, NHEAD, HEAD_DIM)
    scores = jnp.einsum("sbhd,hd->sbh", kh, qh) / math.sqrt(HEAD_DIM)
    attn = jax.nn.softmax(scores, axis=0)
    o = jnp.einsum("sbh,sbhd->bhd", attn, vh).reshape(B, EMBED_DIM)
    summary = o @ p["wo"] + p["bo"]
    h = jnp.maximum(summary @ p["w1"] + p["b1"], 0.0)
    res = (h @ p["w2"] + p["b2"]).reshape(B, N_FEATURES, RANK)
    out = jnp.einsum("bkr,rdo->bkdo", res, p["output_weights"])
    return out, p["output_biases"]


if __name__ == "__main__":
    key = jax.random.PRNGKey(0)
    pkey, xkey = jax.random.split(key)
    params = init_params(pkey)
    prepared = prepare_params(params)     # one-time parameter preprocessing
    x = jax.random.normal(xkey, (SEQ, BATCH, EMSIZE), dtype=jnp.float32)
    y_src = jnp.zeros((SEQ, BATCH), dtype=jnp.float32)   # unused for 'output_attention'

    out, biases = factorized_additive_model_decoder(x, y_src, prepared)
    out = jax.block_until_ready(out)
    biases = jax.block_until_ready(biases)

    ref_out, ref_biases = reference_forward(x, params)
    assert out.shape == (BATCH, N_FEATURES, N_BINS, N_OUT)
    assert biases.shape == (N_OUT,)
    # slab_b (the folded layer-2 weights) is stored in bf16 per the perf review; all
    # accumulation is f32, so agreement with the unfolded f32 reference is ~1e-3.
    assert bool(jnp.allclose(out, ref_out, atol=2e-3, rtol=2e-3))
    assert bool(jnp.allclose(biases, ref_biases))
    print("KERNEL_OK")
</pallas_src>

<mosaic_0001>
module attributes {stable_mosaic.version = 11 : i64} {
  func.func @_fused_decoder_kernel(%arg0: i32, %arg1: memref<8x2x32xf32, #tpu.memory_space<vmem>>, %arg2: memref<104x128xf32, #tpu.memory_space<vmem>>, %arg3: memref<65x512xbf16, #tpu.memory_space<vmem>>, %arg4: memref<2x512xf32, #tpu.memory_space<vmem>>) attributes {dimension_semantics = [#tpu.dimension_semantics<parallel>], iteration_bounds = array<i64: 1>, scalar_prefetch = 0 : i64, scratch_operands = 0 : i64, tpu.core_type = #tpu.core_type<tc>, window_params = [{transform_indices = @transform_0, window_bounds = array<i64: 8, 2, 32>}, {pipeline_mode = #tpu.pipeline_mode<synchronous>, transform_indices = @transform_1, window_bounds = array<i64: 104, 128>}, {pipeline_mode = #tpu.pipeline_mode<synchronous>, transform_indices = @transform_2, window_bounds = array<i64: 65, 512>}, {transform_indices = @transform_3, window_bounds = array<i64: 2, 512>}]} {
    %c0 = arith.constant 0 : index
    %c0_0 = arith.constant 0 : index
    %c0_1 = arith.constant 0 : index
    %0 = vector.load %arg1[%c0, %c0_0, %c0_1] : memref<8x2x32xf32, #tpu.memory_space<vmem>>, vector<8x2x32xf32>
    %1 = vector.shape_cast %0 : vector<8x2x32xf32> to vector<16x32xf32>
    %c0_2 = arith.constant 0 : index
    %c0_3 = arith.constant 0 : index
    %2 = vector.load %arg2[%c0_2, %c0_3] : memref<104x128xf32, #tpu.memory_space<vmem>>, vector<32x64xf32>
    %cst = arith.constant dense<0.000000e+00> : vector<16x64xf32>
    %3 = tpu.matmul %1, %2, %cst {dimension_numbers = #tpu.dot_dimension_numbers<[1], [0], [0], [1], [0, 0, 1, 1], [], []>} : vector<16x32xf32>, vector<32x64xf32>, vector<16x64xf32> -> vector<16x64xf32>
    %c36 = arith.constant 36 : index
    %c0_4 = arith.constant 0 : index
    %4 = vector.load %arg2[%c36, %c0_4] : memref<104x128xf32, #tpu.memory_space<vmem>>, vector<1x64xf32>
    %5 = vector.broadcast %4 : vector<1x64xf32> to vector<16x64xf32>
    %6 = arith.addf %3, %5 : vector<16x64xf32>
    %c0_5 = arith.constant 0 : index
    %c64 = arith.constant 64 : index
    %7 = vector.load %arg2[%c0_5, %c64] : memref<104x128xf32, #tpu.memory_space<vmem>>, vector<32x4xf32>
    %cst_6 = arith.constant dense<0.000000e+00> : vector<16x4xf32>
    %8 = tpu.matmul %1, %7, %cst_6 {dimension_numbers = #tpu.dot_dimension_numbers<[1], [0], [0], [1], [0, 0, 1, 1], [], []>} : vector<16x32xf32>, vector<32x4xf32>, vector<16x4xf32> -> vector<16x4xf32>
    %9 = vector.shape_cast %8 : vector<16x4xf32> to vector<8x2x4xf32>
    %cst_7 = arith.constant dense<0xFF800000> : vector<2x4xf32>
    %10 = vector.multi_reduction <maximumf>, %9, %cst_7 [0] : vector<8x2x4xf32> to vector<2x4xf32>
    %11 = vector.shape_cast %10 : vector<2x4xf32> to vector<1x2x4xf32>
    %12 = vector.broadcast %11 : vector<1x2x4xf32> to vector<8x2x4xf32>
    %13 = arith.subf %9, %12 : vector<8x2x4xf32>
    %14 = math.exp %13 : vector<8x2x4xf32>
    %cst_8 = arith.constant dense<0.000000e+00> : vector<2x4xf32>
    %15 = vector.multi_reduction <add>, %14, %cst_8 [0] : vector<8x2x4xf32> to vector<2x4xf32>
    %16 = vector.shape_cast %15 : vector<2x4xf32> to vector<1x2x4xf32>
    %17 = tpu.reciprocal %16 {approx = true} : vector<1x2x4xf32> -> vector<1x2x4xf32>
    %18 = vector.broadcast %17 : vector<1x2x4xf32> to vector<8x2x4xf32>
    %19 = arith.mulf %14, %18 : vector<8x2x4xf32>
    %20 = vector.shape_cast %19 : vector<8x2x4xf32> to vector<16x4xf32>
    %c32 = arith.constant 32 : index
    %c0_9 = arith.constant 0 : index
    %21 = vector.load %arg2[%c32, %c0_9] : memref<104x128xf32, #tpu.memory_space<vmem>>, vector<4x64xf32>
    %cst_10 = arith.constant dense<0.000000e+00> : vector<16x64xf32>
    %22 = tpu.matmul %20, %21, %cst_10 {dimension_numbers = #tpu.dot_dimension_numbers<[1], [0], [0], [1], [0, 0, 1, 1], [], []>} : vector<16x4xf32>, vector<4x64xf32>, vector<16x64xf32> -> vector<16x64xf32>
    %23 = arith.mulf %22, %6 : vector<16x64xf32>
    %24 = vector.shape_cast %23 : vector<16x64xf32> to vector<8x2x64xf32>
    %cst_11 = arith.constant dense<0.000000e+00> : vector<2x64xf32>
    %25 = vector.multi_reduction <add>, %24, %cst_11 [0] : vector<8x2x64xf32> to vector<2x64xf32>
    %c40 = arith.constant 40 : index
    %c0_12 = arith.constant 0 : index
    %26 = vector.load %arg2[%c40, %c0_12] : memref<104x128xf32, #tpu.memory_space<vmem>>, vector<64x64xf32>
    %cst_13 = arith.constant dense<0.000000e+00> : vector<2x64xf32>
    %27 = tpu.matmul %25, %26, %cst_13 {dimension_numbers = #tpu.dot_dimension_numbers<[1], [0], [0], [1], [0, 0, 1, 1], [], []>} : vector<2x64xf32>, vector<64x64xf32>, vector<2x64xf32> -> vector<2x64xf32>
    %c36_14 = arith.constant 36 : index
    %c64_15 = arith.constant 64 : index
    %28 = vector.load %arg2[%c36_14, %c64_15] : memref<104x128xf32, #tpu.memory_space<vmem>>, vector<1x64xf32>
    %29 = vector.broadcast %28 : vector<1x64xf32> to vector<2x64xf32>
    %30 = arith.addf %27, %29 : vector<2x64xf32>
    %cst_16 = arith.constant 0.000000e+00 : f32
    %31 = vector.broadcast %cst_16 : f32 to vector<2x64xf32>
    %32 = arith.maximumf %30, %31 : vector<2x64xf32>
    %33 = arith.truncf %32 : vector<2x64xf32> to vector<2x64xbf16>
    %c0_17 = arith.constant 0 : index
    %c0_18 = arith.constant 0 : index
    %34 = vector.load %arg3[%c0_17, %c0_18] : memref<65x512xbf16, #tpu.memory_space<vmem>>, vector<64x512xbf16>
    %cst_19 = arith.constant dense<0.000000e+00> : vector<2x512xf32>
    %35 = tpu.matmul %33, %34, %cst_19 {dimension_numbers = #tpu.dot_dimension_numbers<[1], [0], [0], [1], [0, 0, 1, 1], [], []>} : vector<2x64xbf16>, vector<64x512xbf16>, vector<2x512xf32> -> vector<2x512xf32>
    %c64_20 = arith.constant 64 : index
    %c0_21 = arith.constant 0 : index
    %36 = vector.load %arg3[%c64_20, %c0_21] : memref<65x512xbf16, #tpu.memory_space<vmem>>, vector<1x512xbf16>
    %37 = arith.extf %36 : vector<1x512xbf16> to vector<1x512xf32>
    %38 = vector.broadcast %37 : vector<1x512xf32> to vector<2x512xf32>
    %39 = arith.addf %35, %38 : vector<2x512xf32>
    %c0_22 = arith.constant 0 : index
    %c0_23 = arith.constant 0 : index
    %40 = vector.load %arg4[%c0_22, %c0_23] : memref<2x512xf32, #tpu.memory_space<vmem>>, vector<2x512xf32>
    tpu.vector_store %arg4[%c0_22, %c0_23], %39 {strides = array<i32>} : memref<2x512xf32, #tpu.memory_space<vmem>>, vector<2x512xf32>,
    return
  }
  func.func @transform_0(%arg0: i32) -> (i32, i32, i32) {
    %c0_i32 = arith.constant 0 : i32
    %c0_i32_0 = arith.constant 0 : i32
    %c0_i32_1 = arith.constant 0 : i32
    return %c0_i32, %arg0, %c0_i32_0 : i32, i32, i32
  }
  func.func @transform_1(%arg0: i32) -> (i32, i32) {
    %c0_i32 = arith.constant 0 : i32
    %c0_i32_0 = arith.constant 0 : i32
    %c0_i32_1 = arith.constant 0 : i32
    return %c0_i32, %c0_i32_0 : i32, i32
  }
  func.func @transform_2(%arg0: i32) -> (i32, i32) {
    %c0_i32 = arith.constant 0 : i32
    %c0_i32_0 = arith.constant 0 : i32
    %c0_i32_1 = arith.constant 0 : i32
    return %c0_i32, %c0_i32_0 : i32, i32
  }
  func.func @transform_3(%arg0: i32) -> (i32, i32) {
    %c0_i32 = arith.constant 0 : i32
    %c0_i32_0 = arith.constant 0 : i32
    return %arg0, %c0_i32 : i32, i32
  }
}

</mosaic_0001>

<bundles_post_ra>
// kernel: factorized_additive_model_decoder.1
= control target key start
LH: loop header
LB: loop body
LE: loop exit
PB: predicated region body
PF: predicated region fallthrough
CT: control target
= control target key end

     0   :  { %8 = vsyncpa [#allocation3], 0  ;;  %s1315_s0 = inlined_call_operand.hbm [shape: f32[8,2,32], index: 0, kind: input, shape index: {}]   ;;  %s1316_s1 = inlined_call_operand.hbm [shape: f32[104,128], index: 1, kind: input, shape index: {}]   ;;  %s1317_s2 = inlined_call_operand.hbm [shape: bf16[65,512], index: 2, kind: input, shape index: {}]   ;;  %s1318_s3 = inlined_call_operand.vmem [shape: f32[2,512], index: 3, kind: output, shape index: {}]  }
   0x1   :  { %9 = vsyncpa [#allocation5], 0  ;;  %s1175_s12 = smov [#allocation4]   ;;  %s1105_s16 = scalar_lea.hbm %s1316_s1, 1664 }
   0x2   :  { %s27_s13 = sshll.u32 %s1175_s12, 4  ;;  %p1106_p0 = scmp.ne.s32.totalorder %s1316_s1, %s1105_s16  ;;  %s28_s13 = int_to_ptr.vmem [resolvable:$true] %s27_s13 }
   0x3   :  { %p1109_p1 = scmp.lt.u32.totalorder %s1105_s16, %s1316_s1 }
   0x5   :  { %p1111_p2 = pnand %p1109_p1, %p1106_p0 }
   0x7   :  { %1114 = shalt.err (!%p1111_p2)
}
   0x8   :  { %s1115_s21 = scalar_lea.vmem %s28_s13, 1664  ;;  %p1120_p4 = scmp.lt.s32.totalorder %s28_s13, %s28_s13 }
   0x9   :  { %p1116_p3 = scmp.ne.s32.totalorder %s28_s13, %s1115_s21  ;;  %p1121_p5 = scmp.lt.s32.totalorder %s1115_s21, %s1115_s21 }
   0xb   :  { %p1122_p6 = por %p1121_p5, %p1120_p4 }
   0xd   :  { %p1123_p7 = pnand %p1122_p6, %p1116_p3 }
   0xf   :  { %1126 = shalt.err (!%p1123_p7)
}
  0x10   :  { %s1176_s22 = smov 128   ;;  %s1177_s23 = smov 8  }
  0x11   :  { %33 = dma.hbm_to_vmem [thread:$0]  %s1316_s1, 1664, %s28_s13, [#allocation5], %s1176_s22, %s1176_s22, %s1177_s23  }
  0x12   :  { %s1178_s26 = smov [#allocation2]   ;;  %s1127_s30 = scalar_lea.hbm %s1315_s0, 256 }
  0x13   :  { %s15_s27 = sshll.u32 %s1178_s26, 4  ;;  %p1128_p8 = scmp.ne.s32.totalorder %s1315_s0, %s1127_s30  ;;  %s16_s27 = int_to_ptr.vmem [resolvable:$true] %s15_s27 }
  0x14   :  { %p1131_p9 = scmp.lt.u32.totalorder %s1127_s30, %s1315_s0 }
  0x16   :  { %p1133_p10 = pnand %p1131_p9, %p1128_p8 }
  0x18   :  { %1136 = shalt.err (!%p1133_p10)
}
  0x19   :  { %s1137_s8 = scalar_lea.vmem %s16_s27, 256  ;;  %p1142_p12 = scmp.lt.s32.totalorder %s16_s27, %s16_s27 }
  0x1a   :  { %p1138_p11 = scmp.ne.s32.totalorder %s16_s27, %s1137_s8  ;;  %p1143_p13 = scmp.lt.s32.totalorder %s1137_s8, %s1137_s8 }
  0x1c   :  { %p1144_p0 = por %p1143_p13, %p1142_p12 }
  0x1e   :  { %p1145_p1 = pnand %p1144_p0, %p1138_p11 }
  0x20   :  { %1148 = shalt.err (!%p1145_p1)
}
  0x21   :  { %s1179_s1 = smov 32   ;;  %s1180_s9 = smov 2  }
  0x22   :  { %21 = dma.hbm_to_vmem [thread:$0]  %s1315_s0, 256, %s16_s27, [#allocation3], %s1179_s1, %s1179_s1, %s1180_s9  }
  0x23   :  { %s1181_s12 = smov [#allocation6]   ;;  %s1149_s16 = scalar_lea.hbm %s1317_s2, 2304 }
  0x24   :  { %s39_s13 = sshll.u32 %s1181_s12, 4  ;;  %p1150_p2 = scmp.ne.s32.totalorder %s1317_s2, %s1149_s16  ;;  %s40_s13 = int_to_ptr.vmem [resolvable:$true] %s39_s13 }
  0x25   :  { %p1153_p3 = scmp.lt.u32.totalorder %s1149_s16, %s1317_s2 }
  0x27   :  { %p1155_p4 = pnand %p1153_p3, %p1150_p2 }
  0x29   :  { %1158 = shalt.err (!%p1155_p4)
}
  0x2a   :  { %s1159_s21 = scalar_lea.vmem %s40_s13, 2304  ;;  %p1164_p6 = scmp.lt.s32.totalorder %s40_s13, %s40_s13 }
  0x2b   :  { %p1160_p5 = scmp.ne.s32.totalorder %s40_s13, %s1159_s21  ;;  %p1165_p7 = scmp.lt.s32.totalorder %s1159_s21, %s1159_s21 }
  0x2d   :  { %p1166_p8 = por %p1165_p7, %p1164_p6 }
  0x2f   :  { %p1167_p9 = pnand %p1166_p8, %p1160_p5 }
  0x31   :  { %1170 = shalt.err (!%p1167_p9)
}
  0x32   :  { %s1182_s0 = smov 256   ;;  %s1183_s22 = smov 16  }
  0x33   :  { %45 = dma.hbm_to_vmem [thread:$0]  %s1317_s2, 2304, %s40_s13, [#allocation5], %s1182_s0, %s1182_s0, %s1183_s22  }
  0x34   :  { %1171 = dma.done.wait [#allocation3], 256  }
  0x35   :  { %1172 = vsyncadd [#allocation3], 4294967040 }
  0x36   :  { %1173 = dma.done.wait [#allocation5], 3968  }
  0x37   :  { %1174 = vsyncadd [#allocation5], 4294963328  ;;  %v86_v0 = vlaneseq  ;;  %v1184_v1 = vmov 1983009808   ;;  %v195_v5 = vld [vmem:[#allocation4] sm:$0xff]  ;;  %v196_v6 = vld [vmem:[#allocation4 + $0x8] sm:$0xff] }
  0x38   :  { %v84_v2 = vunpack.c.l.s4 %v1184_v1  ;;  %v197_v7 = vld [vmem:[#allocation4 + $0x10] sm:$0xff]  ;;  %v1053_v9 = vpack.i.bf16 %v196_v6, %v195_v5  ;;  %v198_v10 = vld [vmem:[#allocation4 + $0x18] sm:$0xff]  ;;  %v1010_v11 = vpack.c.bf16 %v196_v6, %v195_v5  ;;  %s1185_s2 = smov 64   ;;  %vm115_vm0 = vcmask 261120   ;;  %v1258_v32 = vld [vmem:[#allocation4 + $0x24] ss:$0 sm:$0xff] }
  0x39   :  { %v1246_v4 = vshrl.u32 %v86_v0, 7  ;;  %v56_v12 = vld [vmem:[#allocation2] sm:$0x3]  ;;  %v57_v13 = vld [vmem:[#allocation2 + $0x2] sm:$0x3]  ;;  %v1014_v14 = vpack.c.bf16 %v198_v10, %v197_v7  ;;  %v1058_v19 = vpack.i.bf16 %v198_v10, %v197_v7  ;;  %601 = vrot.lane.b32.xlu1 %v1258_v32, %s1185_s2  ;;  %vm446_vm1 = vcmask 1043456  }
  0x3a   :  { %v85_v3 = vunpack.c.0.s8 %v84_v2  ;;  %v58_v15 = vld [vmem:[#allocation2 + $0x4] sm:$0x3]  ;;  %v59_v16 = vld [vmem:[#allocation2 + $0x6] sm:$0x3]  ;;  %v81_v17 = vcombine.low %v56_v12, %v57_v13  ;;  %v60_v18 = vld [vmem:[#allocation2 + $0x8] sm:$0x3]  ;;  %1054 = vrot.lane.b32.xlu0 %v1053_v9, %s1185_s2  ;;  %1011 = vmatprep.subr.bf16.mxu0 %v1010_v11 }
  0x3b   :  { %v82_v20 = vcombine.low %v58_v15, %v59_v16  ;;  %v61_v21 = vld [vmem:[#allocation2 + $0xa] sm:$0x3]  ;;  %v62_v22 = vld [vmem:[#allocation2 + $0xc] sm:$0x3]  ;;  %v63_v23 = vld [vmem:[#allocation2 + $0xe] sm:$0x3]  ;;  %1013 = vmatpush3.bf16.msra.mxu0 %v1010_v11 }
  0x3c   :  { %v1249_v8 = vsub.s32 %v85_v3, %v1246_v4  ;;  %v98_v25 = vcombine.low %v60_v18, %v61_v21  ;;  %v99_v26 = vcombine.low %v62_v22, %v63_v23  ;;  %1015 = vmatprep.subr.bf16.mxu0 %v1014_v14  ;;  %v398_v43 = vld [vmem:[#allocation4 + $0x20] sm:$0xf]  ;;  %vm334_vm2 = vcmask 25600  }
  0x3d   :  { %986 = vmatprep.subr.msk.mxu1 %vm446_vm1, %v398_v43  ;;  %vm441_vm3 = vcmask 31744   ;;  %vm1187_vm4 = vmmov 0   ;;  %vm571_vm5 = vcmask 517120   ;;  %vm604_vm6 = vcmask 523264  }
  0x3e   :  { %v89_v24 = vrot.slane %v81_v17, %v1249_v8  ;;  %v96_v27 = vrot.slane %v82_v20, %v1249_v8  ;;  %v106_v28 = vrot.slane %v98_v25, %v1249_v8  ;;  %v113_v29 = vrot.slane %v99_v26, %v1249_v8  ;;  %1059 = vrot.lane.b32.xlu0 %v1058_v19, %s1185_s2 }
  0x3f   :  { %1017 = vmatpush3.bf16.msra.mxu0 %v1014_v14  ;;  %987 = vmatpush3.msk.msra.mxu1 %vm446_vm1, %v398_v43 }
  0x40   :  { %v97_v30 = vcombine.low %v89_v24, %v96_v27  ;;  %v114_v31 = vcombine.low %v106_v28, %v113_v29 }
  0x42   :  { %972 = vmatprep.mubr.msk.f32.mxu0 %vm115_vm0, %v97_v30 }
  0x43   :  { %973 = vmatmul.mubr.msk.f32.vlgmr.msra.gmra.mrb[0].mxu0 %vm115_vm0, %v114_v31 }
  0x44   :  { %983 = vmatprep.mubr.msk.f32.mxu0 %vm115_vm0, %v97_v30 }
  0xac   :  { %v1055_v33 = vpop.permute.xlu0 %1054 }
  0xad   :  { %v1057_v34 = vunpack.i.h.bf16 %v1055_v33  ;;  %v1056_v35 = vunpack.i.l.bf16 %v1055_v33 }
  0xaf   :  { %v1018_v36 = vpack.c.bf16 %v1057_v34, %v1056_v35 }
  0xb0   :  { %v1060_v37 = vpop.permute.xlu0 %1059 }
  0xb1   :  { %v1062_v38 = vunpack.i.h.bf16 %v1060_v37  ;;  %v1061_v39 = vunpack.i.l.bf16 %v1060_v37  ;;  %1019 = vmatprep.subr.bf16.mxu0 %v1018_v36 }
  0xb2   :  { %1021 = vmatpush3.bf16.msra.mxu0 %v1018_v36 }
  0xb3   :  { %v1022_v40 = vpack.c.bf16 %v1062_v38, %v1061_v39 }
  0xb5   :  { %1023 = vmatprep.subr.bf16.mxu0 %v1022_v40 }
  0xb6   :  { %1025 = vmatpush3.bf16.msra.mxu0 %v1022_v40 }
  0xb9   :  { %984 = vmatmul.mubr.msk.f32.vlgmr.msra.gmra.mrb[2].mxu0 %vm115_vm0, %v114_v31 }
 0x116   :  { %v1262_v41 = vpop.f32.mrb[0].mxu0 }
 0x117   :  { %v1264_v42 = vpop.f32.mrb[1].mxu0 }
 0x18c   :  { %v985_v44 = vpop.f32.mrb[2].mxu0 }
 0x18d   :  { %v309_v45 = vcombine.high %v985_v44, %v985_v44  ;;  %v316_v46 = vrot.slane %v985_v44, %v1249_v8  ;;  %v281_v47 = vpop.f32.mrb[3].mxu0 }
 0x18e   :  { %v292_v48 = vcombine.high %v281_v47, %v281_v47  ;;  %v299_v49 = vrot.slane %v281_v47, %v1249_v8 }
 0x18f   :  { %v323_v50 = vrot.slane %v309_v45, %v1249_v8  ;;  %v324_v51 = vcombine.high %v316_v46, %v316_v46  ;;  %v339_v52 = vsel %vm334_vm2, %v316_v46, -inf }
 0x190   :  { %v306_v53 = vrot.slane %v292_v48, %v1249_v8  ;;  %v307_v54 = vcombine.high %v299_v49, %v299_v49  ;;  %v335_v55 = vsel %vm334_vm2, %v299_v49, -inf }
 0x191   :  { %v325_v56 = vcombine.high %v323_v50, %v323_v50  ;;  %v341_v57 = vsel %vm334_vm2, %v324_v51, -inf  ;;  %v343_v58 = vsel %vm334_vm2, %v323_v50, -inf  ;;  %v340_v59 = vmax.f32 %v335_v55, %v339_v52 }
 0x192   :  { %v308_v60 = vcombine.high %v306_v53, %v306_v53  ;;  %v336_v61 = vsel %vm334_vm2, %v307_v54, -inf  ;;  %v337_v62 = vsel %vm334_vm2, %v306_v53, -inf }
 0x193   :  { %v345_v63 = vsel %vm334_vm2, %v325_v56, -inf  ;;  %v342_v0 = vmax.f32 %v336_v61, %v341_v57  ;;  %v344_v1 = vmax.f32 %v337_v62, %v343_v58 }
 0x194   :  { %v338_v2 = vsel %vm334_vm2, %v308_v60, -inf }
 0x195   :  { %v346_v3 = vmax.f32 %v338_v2, %v345_v63  ;;  %v347_v5 = vmax.f32 %v340_v59, %v342_v0 }
 0x197   :  { %v348_v6 = vmax.f32 %v344_v1, %v346_v3 }
 0x199   :  { %v349_v7 = vmax.f32 %v347_v5, %v348_v6 }
 0x19b   :  { %v350_v9 = vsub.f32 %v299_v49, %v349_v7  ;;  %v351_v10 = vsub.f32 %v307_v54, %v349_v7  ;;  %v352_v11 = vsub.f32 %v306_v53, %v349_v7  ;;  %v353_v12 = vsub.f32 %v308_v60, %v349_v7 }
 0x19c   :  { %v354_v13 = vsub.f32 %v316_v46, %v349_v7  ;;  %v355_v14 = vsub.f32 %v324_v51, %v349_v7  ;;  %v356_v15 = vsub.f32 %v323_v50, %v349_v7  ;;  %v357_v16 = vsub.f32 %v325_v56, %v349_v7  ;;  %v587_v7 = vld [vmem:[#allocation4 + $0x28] sm:$0xff] }
 0x19d   :  { %v358_v17 = vmul.f32 1.442695, %v350_v9  ;;  %v360_v18 = vmul.f32 1.442695, %v351_v10  ;;  %v362_v19 = vmul.f32 1.442695, %v352_v11 }
 0x19e   :  { %v364_v20 = vmul.f32 1.442695, %v353_v12  ;;  %v366_v21 = vmul.f32 1.442695, %v354_v13  ;;  %v368_v22 = vmul.f32 1.442695, %v355_v14 }
 0x19f   :  { %1087 = vpow2.f32 %v358_v17  ;;  %v370_v23 = vmul.f32 1.442695, %v356_v15  ;;  %v372_v24 = vmul.f32 1.442695, %v357_v16  ;;  %v588_v9 = vld [vmem:[#allocation4 + $0x30] sm:$0xff]  ;;  %v1186_v11 = vmov 0.0|0.0  }
 0x1a0   :  { %1089 = vpow2.f32 %v360_v18  ;;  %v1027_v10 = vpack.c.bf16 %v588_v9, %v587_v7  ;;  %1026 = vmatprep.subr.bf16.mxu1 %v1186_v11  ;;  %v589_v12 = vld [vmem:[#allocation4 + $0x38] sm:$0xff]  ;;  %v590_v13 = vld [vmem:[#allocation4 + $0x40] sm:$0xff]  ;;  %v591_v15 = vld [vmem:[#allocation4 + $0x48] sm:$0xff]  ;;  %v1188_v18 = vmov 0.0   ;;  %v602_v7 = vpop.permute.xlu1 %601 }
 0x1a1   :  { %1091 = vpow2.f32 %v362_v19  ;;  %v1030_v14 = vpack.c.bf16 %v590_v13, %v589_v12  ;;  %v592_v16 = vld [vmem:[#allocation4 + $0x50] sm:$0xff]  ;;  %v593_v19 = vld [vmem:[#allocation4 + $0x58] sm:$0xff] }
 0x1a2   :  { %1093 = vpow2.f32 %v364_v20  ;;  %v1033_v17 = vpack.c.bf16 %v592_v16, %v591_v15  ;;  %v594_v20 = vld [vmem:[#allocation4 + $0x60] sm:$0xff]  ;;  %v697_v15 = vld [vmem:[#allocation6 + $0x88] sm:$0x11] }
 0x1a3   :  { %1095 = vpow2.f32 %v366_v21  ;;  %v1036_v21 = vpack.c.bf16 %v594_v20, %v593_v19  ;;  %v701_v20 = vunpack.c.h.bf16 %v697_v15 }
 0x1a4   :  { %1097 = vpow2.f32 %v368_v22  ;;  %v1063_v22 = vld [vmem:[#allocation6] ss:$16 sps:$4 sm:$0xff]  }
 0x1a5   :  { %1099 = vpow2.f32 %v370_v23  ;;  %v1065_v23 = vld [vmem:[#allocation6 + $0x4] ss:$16 sps:$4 sm:$0xff]  }
 0x1a6   :  { %1101 = vpow2.f32 %v372_v24  ;;  %v1068_v24 = vld [vmem:[#allocation6 + $0xc] ss:$16 sps:$4 sm:$0xff]   ;;  %801 = vmatprep.subr.bf16.mxu0 %v1065_v23 }
 0x1a7   :  { %802 = vmatpush1.bf16.msra.mxu0 %v1063_v22 }
 0x1a9   :  { %v1088_v25 = vpop.eup %1087 }
 0x1aa   :  { %v1090_v26 = vpop.eup %1089  ;;  %v374_v27 = vsel %vm334_vm2, %v1088_v25, 0.0 }
 0x1ab   :  { %v1092_v28 = vpop.eup %1091  ;;  %v375_v29 = vsel %vm334_vm2, %v1090_v26, 0.0 }
 0x1ac   :  { %v1094_v30 = vpop.eup %1093  ;;  %v376_v31 = vadd.f32 %v375_v29, %v374_v27  ;;  %v377_v33 = vsel %vm334_vm2, %v1092_v28, 0.0  ;;  %v1077_v27 = vld [vmem:[#allocation6 + $0x44] ss:$16 sps:$4 sm:$0xff]   ;;  %v192_v29 = vadd.f32 %v1262_v41, %v1258_v32 }
 0x1ad   :  { %v1096_v34 = vpop.eup %1095  ;;  %v379_v36 = vsel %vm334_vm2, %v1094_v30, 0.0 }
 0x1ae   :  { %v378_v35 = vadd.f32 %v377_v33, %v376_v31  ;;  %v1098_v37 = vpop.eup %1097  ;;  %v381_v39 = vsel %vm334_vm2, %v1096_v34, 0.0 }
 0x1af   :  { %v1100_v40 = vpop.eup %1099  ;;  %v383_v44 = vsel %vm334_vm2, %v1098_v37, 0.0 }
 0x1b0   :  { %v380_v38 = vadd.f32 %v379_v36, %v378_v35  ;;  %v1102_v45 = vpop.eup %1101  ;;  %v385_v47 = vsel %vm334_vm2, %v1100_v40, 0.0 }
 0x1b1   :  { %v387_v49 = vsel %vm334_vm2, %v1102_v45, 0.0 }
 0x1b2   :  { %v382_v43 = vadd.f32 %v381_v39, %v380_v38 }
 0x1b4   :  { %v384_v46 = vadd.f32 %v383_v44, %v382_v43 }
 0x1b6   :  { %v386_v48 = vadd.f32 %v385_v47, %v384_v46 }
 0x1b8   :  { %v388_v50 = vadd.f32 %v387_v49, %v386_v48 }
 0x1ba   :  { %1103 = vrcp.f32 %v388_v50 }
 0x1c4   :  { %v1104_v51 = vpop.eup %1103 }
 0x1c5   :  { %v390_v52 = vmul.f32 %v1104_v51, %v1088_v25  ;;  %v391_v53 = vmul.f32 %v1104_v51, %v1090_v26  ;;  %v392_v54 = vmul.f32 %v1104_v51, %v1092_v28  ;;  %v393_v55 = vmul.f32 %v1104_v51, %v1094_v30  ;;  %v1071_v25 = vld [vmem:[#allocation6 + $0x24] ss:$16 sps:$4 sm:$0xff]   ;;  %v1069_v26 = vld [vmem:[#allocation6 + $0x20] ss:$16 sps:$4 sm:$0xff]  }
 0x1c6   :  { %v394_v56 = vmul.f32 %v1104_v51, %v1096_v34  ;;  %v395_v57 = vmul.f32 %v1104_v51, %v1098_v37  ;;  %v396_v58 = vmul.f32 %v1104_v51, %v1100_v40  ;;  %v397_v59 = vmul.f32 %v1104_v51, %v1102_v45  ;;  %803 = vmatprep.subr.bf16.mxu0 %v1071_v25  ;;  %v1075_v28 = vld [vmem:[#allocation6 + $0x40] ss:$16 sps:$4 sm:$0xff]  }
 0x1c7   :  { %v407_v60 = vcombine.low %v390_v52, %v391_v53  ;;  %v408_v61 = vcombine.low %v392_v54, %v393_v55  ;;  %804 = vmatpush1.bf16.msra.mxu0 %v1069_v26  ;;  %v187_v30 = vadd.f32 %v1258_v32, %v1264_v42 }
 0x1c8   :  { %v424_v62 = vcombine.low %v394_v56, %v395_v57  ;;  %v425_v63 = vcombine.low %v396_v58, %v397_v59  ;;  %805 = vmatprep.subr.bf16.mxu0 %v1077_v27  ;;  %v1066_v59 = vld [vmem:[#allocation6 + $0x8] ss:$16 sps:$4 sm:$0xff]  }
 0x1c9   :  { %v415_v0 = vrot.slane %v407_v60, %v1249_v8  ;;  %v422_v1 = vrot.slane %v408_v61, %v1249_v8  ;;  %v1074_v61 = vld [vmem:[#allocation6 + $0x2c] ss:$16 sps:$4 sm:$0xff]  }
 0x1ca   :  { %v432_v2 = vrot.slane %v424_v62, %v1249_v8  ;;  %v439_v3 = vrot.slane %v425_v63, %v1249_v8  ;;  %v1072_v62 = vld [vmem:[#allocation6 + $0x28] ss:$16 sps:$4 sm:$0xff]   ;;  %v1080_v63 = vld [vmem:[#allocation6 + $0x4c] ss:$16 sps:$4 sm:$0xff]  }
 0x1cb   :  { %v423_v5 = vcombine.low %v415_v0, %v422_v1  ;;  %806 = vmatpush1.bf16.msra.mxu0 %v1075_v28  ;;  %v1078_v0 = vld [vmem:[#allocation6 + $0x48] ss:$16 sps:$4 sm:$0xff]   ;;  %v1081_v1 = vld [vmem:[#allocation6 + $0x60] ss:$16 sps:$4 sm:$0xff]  }
 0x1cc   :  { %v440_v6 = vcombine.low %v432_v2, %v439_v3  ;;  %v1083_v2 = vld [vmem:[#allocation6 + $0x64] ss:$16 sps:$4 sm:$0xff]   ;;  %v1084_v3 = vld [vmem:[#allocation6 + $0x68] ss:$16 sps:$4 sm:$0xff]  }
 0x1cd   :  { %988 = vmatprep.mubr.msk.f32.mxu1 %vm441_vm3, %v423_v5  ;;  %v1086_v5 = vld [vmem:[#allocation6 + $0x6c] ss:$16 sps:$4 sm:$0xff]   ;;  %807 = vmatprep.subr.bf16.mxu0 %v1083_v2 }
 0x1ce   :  { %989 = vmatmul.mubr.msk.f32.vlgmr.msra.gmra.mrb[0].mxu1 %vm441_vm3, %v440_v6  ;;  %v1189_v6 = vmov 0  }
 0x1cf   :  { %1028 = vmatpush3.bf16.msra.mxu1 %v1027_v10  ;;  %1007 = vmatprep.mubr.msk.f32.mxu1 %vm1187_vm4, %v1188_v18  ;;  %v700_v18 = vunpack.c.l.bf16 %v697_v15 }
 0x1d0   :  { %1029 = vmatprep.subr.bf16.mxu1 %v1186_v11  ;;  %833 = vmatprep.mubr.bf16.mxu0 %v1189_v6 }
 0x1d1   :  { %808 = vmatpush1.bf16.msra.mxu0 %v1081_v1 }
 0x1d3   :  { %1031 = vmatpush3.bf16.msra.mxu1 %v1030_v14  ;;  %v696_v14 = vld [vmem:[#allocation6 + $0x80] sm:$0x11] }
 0x1d4   :  { %1032 = vmatprep.subr.bf16.mxu1 %v1186_v11  ;;  %v698_v16 = vunpack.c.l.bf16 %v696_v14  ;;  %v699_v19 = vunpack.c.h.bf16 %v696_v14 }
 0x1d7   :  { %1034 = vmatpush3.bf16.msra.mxu1 %v1033_v17  ;;  %v704_v17 = vsub.s32 0, %v1246_v4 }
 0x1d8   :  { %1035 = vmatprep.subr.bf16.mxu1 %v1186_v11 }
 0x1d9   :  { %v713_v22 = vrot.slane %v700_v18, %v704_v17  ;;  %v709_v23 = vrot.slane %v699_v19, %v704_v17 }
 0x1db   :  { %1037 = vmatpush3.bf16.msra.mxu1 %v1036_v21  ;;  %v705_v21 = vrot.slane %v698_v16, %v704_v17 }
 0x1dc   :  { %842 = vmatprep.subr.bf16.mxu1 %v1068_v24  ;;  %v717_v24 = vrot.slane %v701_v20, %v704_v17 }
 0x2a1   :  { %v990_v31 = vpop.f32.mrb[0].mxu1 }
 0x2a2   :  { %v526_v33 = vmul.f32 %v990_v31, %v192_v29  ;;  %v516_v34 = vpop.f32.mrb[1].mxu1 }
 0x2a3   :  { %v525_v35 = vmul.f32 %v516_v34, %v187_v30 }
 0x2a4   :  { %v546_v40 = vcombine.high %v526_v33, %v526_v33  ;;  %v553_v43 = vrot.slane %v526_v33, %v1249_v8 }
 0x2a5   :  { %v529_v36 = vcombine.high %v525_v35, %v525_v35  ;;  %v536_v37 = vrot.slane %v525_v35, %v1249_v8 }
 0x2a6   :  { %v560_v47 = vrot.slane %v546_v40, %v1249_v8  ;;  %v561_v48 = vcombine.high %v553_v43, %v553_v43  ;;  %v579_v51 = vsel %vm571_vm5, %v553_v43, 0.0 }
 0x2a7   :  { %v543_v38 = vrot.slane %v529_v36, %v1249_v8  ;;  %v544_v39 = vcombine.high %v536_v37, %v536_v37  ;;  %v572_v41 = vsel %vm571_vm5, %v536_v37, 0.0 }
 0x2a8   :  { %v562_v53 = vcombine.high %v560_v47, %v560_v47  ;;  %v581_v54 = vsel %vm571_vm5, %v561_v48, 0.0  ;;  %v583_v56 = vsel %vm571_vm5, %v560_v47, 0.0 }
 0x2a9   :  { %v545_v44 = vcombine.high %v543_v38, %v543_v38  ;;  %v573_v45 = vsel %vm571_vm5, %v544_v39, 0.0  ;;  %v575_v42 = vsel %vm571_vm5, %v543_v38, 0.0 }
 0x2aa   :  { %v574_v32 = vadd.f32 %v573_v45, %v572_v41  ;;  %v585_v58 = vsel %vm571_vm5, %v562_v53, 0.0 }
 0x2ab   :  { %v577_v49 = vsel %vm571_vm5, %v545_v44, 0.0 }
 0x2ac   :  { %v576_v46 = vadd.f32 %v575_v42, %v574_v32 }
 0x2ae   :  { %v578_v50 = vadd.f32 %v577_v49, %v576_v46 }
 0x2b0   :  { %v580_v52 = vadd.f32 %v579_v51, %v578_v50 }
 0x2b2   :  { %v582_v55 = vadd.f32 %v581_v54, %v580_v52 }
 0x2b4   :  { %v584_v57 = vadd.f32 %v583_v56, %v582_v55 }
 0x2b6   :  { %v586_v60 = vadd.f32 %v585_v58, %v584_v57 }
 0x2b8   :  { %1008 = vmatmul.mubr.msk.f32.vlgmr.msra.gmra.mrb[2].mxu1 %vm604_vm6, %v586_v60 }
 0x2b9   :  { %843 = vmatpush1.bf16.msra.mxu1 %v1066_v59  ;;  %874 = vmatprep.mubr.bf16.mxu1 %v1189_v6 }
 0x2ba   :  { %844 = vmatprep.subr.bf16.mxu1 %v1074_v61 }
 0x2bd   :  { %845 = vmatpush1.bf16.msra.mxu1 %v1072_v62 }
 0x2be   :  { %846 = vmatprep.subr.bf16.mxu1 %v1080_v63 }
 0x2c1   :  { %847 = vmatpush1.bf16.msra.mxu1 %v1078_v0 }
 0x2c2   :  { %848 = vmatprep.subr.bf16.mxu1 %v1086_v5 }
 0x2c5   :  { %849 = vmatpush1.bf16.msra.mxu1 %v1084_v3 }
 0x38b   :  { %v674_v9 = vpop.f32.mrb[2].mxu1 }
 0x38c   :  { %v675_v10 = vadd.f32 %v674_v9, %v602_v7  ;;  %v1009_v11 = vpop.f32.mrb[3].mxu1 }
 0x38e   :  { %v678_v12 = vmax.f32 %v675_v10, 0.0 }
 0x390   :  { %v679_v13 = vpack.c.bf16 %v678_v12, %v678_v12 }
 0x392   :  { %938 = vmatmul.mubr.msk.bf16.vlgmr.msra.gmra.mrb[4].mxu0 %vm604_vm6, %v679_v13  ;;  %939 = vmatmul.mubr.msk.bf16.vlgmr.msra.gmra.mrb[4].mxu1 %vm604_vm6, %v679_v13 }
 0x465   :  { %v835_v25 = vpop.f32.mrb[4].mxu0  ;;  %v876_v26 = vpop.f32.mrb[4].mxu1 }
 0x466   :  { %v836_v27 = vadd.f32 %v835_v25, %v705_v21  ;;  %v877_v28 = vadd.f32 %v876_v26, %v713_v22  ;;  %v837_v29 = vpop.f32.mrb[5].mxu0  ;;  %v878_v30 = vpop.f32.mrb[5].mxu1 }
 0x467   :  { %v838_v31 = vadd.f32 %v837_v29, %v709_v23  ;;  %v879_v33 = vadd.f32 %v878_v30, %v717_v24  ;;  %v839_v34 = vpop.f32.mrb[6].mxu0  ;;  %v880_v35 = vpop.f32.mrb[6].mxu1 }
 0x468   :  { %v840_v36 = vpop.f32.mrb[7].mxu0  ;;  %v881_v37 = vpop.f32.mrb[7].mxu1 }
 0x469   :  { %v887_v4 = vcombine.low %v836_v27, %v838_v31  ;;  %v888_v38 = vcombine.low %v877_v28, %v879_v33 }
 0x46b   :  { %v895_v39 = vrot.slane %v887_v4, %v1249_v8  ;;  %v902_v40 = vrot.slane %v888_v38, %v1249_v8 }
 0x46d   :  { %v903_v43 = vcombine.low %v895_v39, %v902_v40 }
 0x46f   :  { %905 = vst [vmem:[%s1318_s3] sm:$0xff] %v903_v43 }
 0x470   :  { %910 = vsyncpa [#allocation3], 1 }
 0x471   :  { %911 = vsyncpa [#allocation5], 1 }

</bundles_post_ra>
